<compile_context>
chip_gen: v7x
topology: tpu7x:2x2x1
jax: 0.10.0
libtpu: 0.0.40
codegen_flags: <defaults>
</compile_context>

<pallas_src>
import functools

import jax
import jax.numpy as jnp
from jax.experimental import pallas as pl
from jax.experimental.pallas import tpu as pltpu

LANES = 128


def _round_up(x, m):
    return ((x + m - 1) // m) * m


def _dice_sums_kernel(pred_ref, tgt_ref, out_ref, acc_inter, acc_denom,
                      *, valid_rows, full_blocks, needs_mask):
    c = pl.program_id(0)           # core-split axis ("parallel")
    k = pl.program_id(1)           # reduction axis ("arbitrary")
    steps = pl.num_programs(1)
    block_rows = pred_ref.shape[0]
    sub = block_rows // 8

    @pl.when(k == 0)
    def _():
        acc_inter[...] = jnp.zeros_like(acc_inter)
        acc_denom[...] = jnp.zeros_like(acc_denom)

    # In-kernel dtype casts (inputs stream in their native dtype).
    x = pred_ref[...].astype(jnp.float32)
    # sigmoid(x) == 0.5*tanh(0.5*x) + 0.5 : one transcendental instead of two.
    p = 0.5 * jnp.tanh(0.5 * x) + 0.5
    t = tgt_ref[...].astype(jnp.float32)

    def _accumulate(p_v, t_v):
        # Fold the tile into one (8,128) vreg per accumulator.  The reshape
        # groups whole (8,128) tiles, so the leading-axis sum is pure VPU.
        acc_inter[...] += jnp.sum((p_v * t_v).reshape(sub, 8, LANES), axis=0)
        acc_denom[...] += jnp.sum((p_v + t_v).reshape(sub, 8, LANES), axis=0)

    if needs_mask:
        # Only the last block(s) can contain invalid rows (partial tile past
        # the array end, or the clamped redundant block of the core split).
        i_global = c * steps + k
        is_tail = i_global >= full_blocks

        @pl.when(is_tail)
        def _():
            row = (jax.lax.broadcasted_iota(jnp.int32, (block_rows, LANES), 0)
                   + i_global * block_rows)
            mask = row < valid_rows
            zero = jnp.float32(0)
            _accumulate(jnp.where(mask, p, zero), jnp.where(mask, t, zero))

        @pl.when(i_global < full_blocks)
        def _():
            _accumulate(p, t)
    else:
        _accumulate(p, t)

    @pl.when(k == steps - 1)
    def _():
        # One-time sublane collapse; the 128-lane reduce happens in JAX.
        inter = jnp.sum(acc_inter[...], axis=0, keepdims=True)
        denom = jnp.sum(acc_denom[...], axis=0, keepdims=True)
        out_ref[0, :, :] = jnp.concatenate([inter, denom], axis=0)


def _dice_sums(pred_2d, tgt_2d, block_rows):
    """Returns (num_splits, 2, 128) partial sums: [:,0]=intersection, [:,1]=p+t."""
    R = pred_2d.shape[0]

    # Keep the tile a multiple of 32 rows (legal for f32/bf16/int8 tiling and
    # for the in-kernel (sub,8,128) fold), clamped near the array size.
    block_rows = min(block_rows, _round_up(R, 32))
    block_rows = max(32, _round_up(block_rows, 32))

    steps_total = pl.cdiv(R, block_rows)
    num_splits = 2 if steps_total >= 2 else 1      # 2 TCs on v7x; serial elsewhere
    steps_per_core = pl.cdiv(steps_total, num_splits)
    coverage_rows = num_splits * steps_per_core * block_rows
    needs_mask = coverage_rows != R
    full_blocks = R // block_rows                  # blocks entirely inside [0, R)
    last_block = steps_total - 1

    def in_map(c, k):
        # Clamp the (at most one) redundant trailing block to a valid window;
        # its contribution is fully masked out in the kernel.
        return (jnp.minimum(c * steps_per_core + k, last_block), 0)

    kernel = functools.partial(
        _dice_sums_kernel,
        valid_rows=R, full_blocks=full_blocks, needs_mask=needs_mask)

    in_bytes = (pred_2d.size * pred_2d.dtype.itemsize
                + tgt_2d.size * tgt_2d.dtype.itemsize)

    out = pl.pallas_call(
        kernel,
        out_shape=jax.ShapeDtypeStruct((num_splits, 2, LANES), jnp.float32),
        grid_spec=pltpu.PrefetchScalarGridSpec(
            num_scalar_prefetch=0,
            grid=(num_splits, steps_per_core),
            in_specs=[
                pl.BlockSpec((block_rows, LANES), in_map),
                pl.BlockSpec((block_rows, LANES), in_map),
            ],
            out_specs=pl.BlockSpec((1, 2, LANES), lambda c, k: (c, 0, 0)),
            scratch_shapes=[pltpu.VMEM((8, LANES), jnp.float32)] * 2,
        ),
        compiler_params=pltpu.CompilerParams(
            # Core-split axis is parallel (v7x megacore); reduction axis is
            # arbitrary (output block resident across it).
            dimension_semantics=("parallel", "arbitrary"),
        ),
        cost_estimate=pl.CostEstimate(
            flops=6 * pred_2d.size,
            transcendentals=pred_2d.size,
            bytes_accessed=in_bytes + num_splits * 2 * LANES * 4,
        ),
    )(pred_2d, tgt_2d)
    return out


def dice_loss_pallas(pred, target, smooth=1e-6, block_rows=4096):
    """Matches torch: sigmoid(pred); flatten; dice = (2*I+s)/(sum_p+sum_t+s); 1-dice."""
    pred = jnp.asarray(pred)
    target = jnp.asarray(target)

    # Keep streams narrow: no wrapper-side f32 upcasts unless unavoidable.
    if pred.dtype not in (jnp.float32, jnp.bfloat16):
        pred = pred.astype(jnp.float32)
    if target.dtype == jnp.bool_:
        target = target.astype(jnp.int8)          # 1 B/elem stream; f32 cast in-kernel
    elif target.dtype not in (jnp.float32, jnp.bfloat16, jnp.int8, jnp.uint8,
                              jnp.int32):
        target = target.astype(jnp.float32)

    pred_flat = pred.reshape(-1)
    tgt_flat = target.reshape(-1)
    n = pred_flat.shape[0]
    R = n // LANES
    rem = n - R * LANES

    intersection = jnp.float32(0.0)
    denom = jnp.float32(0.0)

    if R > 0:
        n_main = R * LANES
        if rem:
            # Contiguous prefix slice only in the ragged case.
            pred_2d = jax.lax.slice(pred_flat, (0,), (n_main,)).reshape(R, LANES)
            tgt_2d = jax.lax.slice(tgt_flat, (0,), (n_main,)).reshape(R, LANES)
        else:
            pred_2d = pred_flat.reshape(R, LANES)   # free reshape
            tgt_2d = tgt_flat.reshape(R, LANES)
        sums = _dice_sums(pred_2d, tgt_2d, block_rows)
        intersection = intersection + jnp.sum(sums[:, 0, :])
        denom = denom + jnp.sum(sums[:, 1, :])

    if rem:
        # <128-element ragged tail handled in plain JAX (negligible work).
        p_tail = jax.nn.sigmoid(pred_flat[R * LANES:].astype(jnp.float32))
        t_tail = tgt_flat[R * LANES:].astype(jnp.float32)
        intersection = intersection + jnp.sum(p_tail * t_tail)
        denom = denom + jnp.sum(p_tail) + jnp.sum(t_tail)

    dice = (2.0 * intersection + smooth) / (denom + smooth)
    return (1.0 - dice).astype(jnp.float32)


class DiceLoss:
    """Dice Loss for segmentation (Pallas TPU implementation)."""

    def __init__(self, smooth=1e-6):
        self.smooth = smooth

    def __call__(self, pred, target):
        return dice_loss_pallas(pred, target, self.smooth)


def _dice_loss_ref(pred, target, smooth=1e-6):
    p = jax.nn.sigmoid(jnp.asarray(pred, jnp.float32)).reshape(-1)
    t = jnp.asarray(target, jnp.float32).reshape(-1)
    inter = jnp.sum(p * t)
    dice = (2.0 * inter + smooth) / (jnp.sum(p) + jnp.sum(t) + smooth)
    return 1.0 - dice


if __name__ == "__main__":
    key = jax.random.PRNGKey(0)
    keys = jax.random.split(key, 6)
    loss_fn = DiceLoss(smooth=1e-6)

    # (1) 128-aligned segmentation logits + bool target (int8 stream path).
    pred = jax.random.normal(keys[0], (2, 4, 16, 16), dtype=jnp.float32)
    target = jax.random.uniform(keys[1], (2, 4, 16, 16)) > 0.5
    loss = jax.block_until_ready(loss_fn(pred, target))
    ref = _dice_loss_ref(pred, target, smooth=1e-6)
    assert jnp.allclose(loss, ref, atol=1e-5, rtol=1e-5), (loss, ref)

    # (2) ragged element count (not a multiple of 128): JAX tail + in-kernel mask.
    pred_r = jax.random.normal(keys[2], (2, 3, 7, 5), dtype=jnp.float32)
    target_r = (jax.random.uniform(keys[3], (2, 3, 7, 5)) > 0.5).astype(jnp.float32)
    loss_r = jax.block_until_ready(loss_fn(pred_r, target_r))
    ref_r = _dice_loss_ref(pred_r, target_r, smooth=1e-6)
    assert jnp.allclose(loss_r, ref_r, atol=1e-5, rtol=1e-5), (loss_r, ref_r)

    # (3) multi-block grid with an odd block count: exercises the 2-way core
    #     split, the clamped redundant block and the tail-only mask path.
    pred_m = jax.random.normal(keys[4], (2, 4, 40, 64), dtype=jnp.float32)
    target_m = (jax.random.uniform(keys[5], (2, 4, 40, 64)) > 0.5).astype(jnp.float32)
    loss_m = jax.block_until_ready(dice_loss_pallas(pred_m, target_m, block_rows=64))
    ref_m = _dice_loss_ref(pred_m, target_m, smooth=1e-6)
    assert jnp.allclose(loss_m, ref_m, atol=1e-5, rtol=1e-5), (loss_m, ref_m)

    print("KERNEL_OK")
</pallas_src>

<mosaic_0001>
module attributes {stable_mosaic.version = 11 : i64} {
  func.func @_dice_sums_kernel(%arg0: i32, %arg1: i32, %arg2: memref<32x128xf32, #tpu.memory_space<vmem>>, %arg3: memref<32x128xi8, #tpu.memory_space<vmem>>, %arg4: memref<1x2x128xf32, #tpu.memory_space<vmem>>, %arg5: memref<8x128xf32, #tpu.memory_space<vmem>>, %arg6: memref<8x128xf32, #tpu.memory_space<vmem>>) attributes {dimension_semantics = [#tpu.dimension_semantics<parallel>, #tpu.dimension_semantics<arbitrary>], iteration_bounds = array<i64: 1, 1>, scalar_prefetch = 0 : i64, scratch_operands = 2 : i64, tpu.core_type = #tpu.core_type<tc>, window_params = [{transform_indices = @transform_0, window_bounds = array<i64: 32, 128>}, {transform_indices = @transform_1, window_bounds = array<i64: 32, 128>}, {transform_indices = @transform_2, window_bounds = array<i64: 1, 2, 128>}]} {
    %c0_i32 = arith.constant 0 : i32
    %0 = arith.cmpi eq, %arg1, %c0_i32 : i32
    %1 = arith.extui %0 : i1 to i32
    %c0_i32_0 = arith.constant 0 : i32
    %2 = arith.cmpi ne, %1, %c0_i32_0 : i32
    scf.if %2 {
      %cst_12 = arith.constant 0.000000e+00 : f32
      %24 = vector.broadcast %cst_12 : f32 to vector<8x128xf32>
      %c0_13 = arith.constant 0 : index
      %c0_14 = arith.constant 0 : index
      %25 = vector.load %arg5[%c0_13, %c0_14] : memref<8x128xf32, #tpu.memory_space<vmem>>, vector<8x128xf32>
      tpu.vector_store %arg5[%c0_13, %c0_14], %24 {strides = array<i32>} : memref<8x128xf32, #tpu.memory_space<vmem>>, vector<8x128xf32>,
      %cst_15 = arith.constant 0.000000e+00 : f32
      %26 = vector.broadcast %cst_15 : f32 to vector<8x128xf32>
      %c0_16 = arith.constant 0 : index
      %c0_17 = arith.constant 0 : index
      %27 = vector.load %arg6[%c0_16, %c0_17] : memref<8x128xf32, #tpu.memory_space<vmem>>, vector<8x128xf32>
      tpu.vector_store %arg6[%c0_16, %c0_17], %26 {strides = array<i32>} : memref<8x128xf32, #tpu.memory_space<vmem>>, vector<8x128xf32>,
    } else {
    }
    %c0 = arith.constant 0 : index
    %c0_1 = arith.constant 0 : index
    %3 = vector.load %arg2[%c0, %c0_1] : memref<32x128xf32, #tpu.memory_space<vmem>>, vector<32x128xf32>
    %cst = arith.constant 5.000000e-01 : f32
    %4 = vector.broadcast %cst : f32 to vector<32x128xf32>
    %5 = arith.mulf %4, %3 : vector<32x128xf32>
    %6 = math.tanh %5 : vector<32x128xf32>
    %cst_2 = arith.constant 5.000000e-01 : f32
    %7 = vector.broadcast %cst_2 : f32 to vector<32x128xf32>
    %8 = arith.mulf %7, %6 : vector<32x128xf32>
    %cst_3 = arith.constant 5.000000e-01 : f32
    %9 = vector.broadcast %cst_3 : f32 to vector<32x128xf32>
    %10 = arith.addf %8, %9 : vector<32x128xf32>
    %c0_4 = arith.constant 0 : index
    %c0_5 = arith.constant 0 : index
    %11 = vector.load %arg3[%c0_4, %c0_5] : memref<32x128xi8, #tpu.memory_space<vmem>>, vector<32x128xi8>
    %12 = arith.sitofp %11 : vector<32x128xi8> to vector<32x128xf32>
    %c1_i32 = arith.constant 1 : i32
    %13 = arith.muli %arg0, %c1_i32 : i32
    %14 = arith.addi %13, %arg1 : i32
    %c0_i32_6 = arith.constant 0 : i32
    %15 = arith.cmpi sge, %14, %c0_i32_6 : i32
    %16 = arith.extui %15 : i1 to i32
    %c0_i32_7 = arith.constant 0 : i32
    %17 = arith.cmpi ne, %16, %c0_i32_7 : i32
    scf.if %17 {
      %24 = tpu.iota {dimensions = array<i32: 0>} : vector<32x128xi32>
      %c32_i32 = arith.constant 32 : i32
      %25 = arith.muli %14, %c32_i32 : i32
      %26 = vector.broadcast %25 : i32 to vector<32x128xi32>
      %27 = arith.addi %24, %26 : vector<32x128xi32>
      %c16_i32 = arith.constant 16 : i32
      %28 = vector.broadcast %c16_i32 : i32 to vector<32x128xi32>
      %29 = arith.cmpi slt, %27, %28 : vector<32x128xi32>
      %cst_12 = arith.constant 0.000000e+00 : f32
      %30 = vector.broadcast %cst_12 : f32 to vector<32x128xf32>
      %31 = arith.select %29, %10, %30 : vector<32x128xi1>, vector<32x128xf32>
      %cst_13 = arith.constant 0.000000e+00 : f32
      %32 = vector.broadcast %cst_13 : f32 to vector<32x128xf32>
      %33 = arith.select %29, %12, %32 : vector<32x128xi1>, vector<32x128xf32>
      %c0_14 = arith.constant 0 : index
      %c0_15 = arith.constant 0 : index
      %34 = vector.load %arg5[%c0_14, %c0_15] : memref<8x128xf32, #tpu.memory_space<vmem>>, vector<8x128xf32>
      %35 = arith.mulf %31, %33 : vector<32x128xf32>
      %36 = vector.shape_cast %35 : vector<32x128xf32> to vector<4x8x128xf32>
      %cst_16 = arith.constant dense<0.000000e+00> : vector<8x128xf32>
      %37 = vector.multi_reduction <add>, %36, %cst_16 [0] : vector<4x8x128xf32> to vector<8x128xf32>
      %38 = arith.addf %34, %37 : vector<8x128xf32>
      %c0_17 = arith.constant 0 : index
      %c0_18 = arith.constant 0 : index
      %39 = vector.load %arg5[%c0_17, %c0_18] : memref<8x128xf32, #tpu.memory_space<vmem>>, vector<8x128xf32>
      tpu.vector_store %arg5[%c0_17, %c0_18], %38 {strides = array<i32>} : memref<8x128xf32, #tpu.memory_space<vmem>>, vector<8x128xf32>,
      %c0_19 = arith.constant 0 : index
      %c0_20 = arith.constant 0 : index
      %40 = vector.load %arg6[%c0_19, %c0_20] : memref<8x128xf32, #tpu.memory_space<vmem>>, vector<8x128xf32>
      %41 = arith.addf %31, %33 : vector<32x128xf32>
      %42 = vector.shape_cast %41 : vector<32x128xf32> to vector<4x8x128xf32>
      %cst_21 = arith.constant dense<0.000000e+00> : vector<8x128xf32>
      %43 = vector.multi_reduction <add>, %42, %cst_21 [0] : vector<4x8x128xf32> to vector<8x128xf32>
      %44 = arith.addf %40, %43 : vector<8x128xf32>
      %c0_22 = arith.constant 0 : index
      %c0_23 = arith.constant 0 : index
      %45 = vector.load %arg6[%c0_22, %c0_23] : memref<8x128xf32, #tpu.memory_space<vmem>>, vector<8x128xf32>
      tpu.vector_store %arg6[%c0_22, %c0_23], %44 {strides = array<i32>} : memref<8x128xf32, #tpu.memory_space<vmem>>, vector<8x128xf32>,
    } else {
    }
    %c0_i32_8 = arith.constant 0 : i32
    %18 = arith.cmpi slt, %14, %c0_i32_8 : i32
    %19 = arith.extui %18 : i1 to i32
    %c0_i32_9 = arith.constant 0 : i32
    %20 = arith.cmpi ne, %19, %c0_i32_9 : i32
    scf.if %20 {
      %c0_12 = arith.constant 0 : index
      %c0_13 = arith.constant 0 : index
      %24 = vector.load %arg5[%c0_12, %c0_13] : memref<8x128xf32, #tpu.memory_space<vmem>>, vector<8x128xf32>
      %25 = arith.mulf %10, %12 : vector<32x128xf32>
      %26 = vector.shape_cast %25 : vector<32x128xf32> to vector<4x8x128xf32>
      %cst_14 = arith.constant dense<0.000000e+00> : vector<8x128xf32>
      %27 = vector.multi_reduction <add>, %26, %cst_14 [0] : vector<4x8x128xf32> to vector<8x128xf32>
      %28 = arith.addf %24, %27 : vector<8x128xf32>
      %c0_15 = arith.constant 0 : index
      %c0_16 = arith.constant 0 : index
      %29 = vector.load %arg5[%c0_15, %c0_16] : memref<8x128xf32, #tpu.memory_space<vmem>>, vector<8x128xf32>
      tpu.vector_store %arg5[%c0_15, %c0_16], %28 {strides = array<i32>} : memref<8x128xf32, #tpu.memory_space<vmem>>, vector<8x128xf32>,
      %c0_17 = arith.constant 0 : index
      %c0_18 = arith.constant 0 : index
      %30 = vector.load %arg6[%c0_17, %c0_18] : memref<8x128xf32, #tpu.memory_space<vmem>>, vector<8x128xf32>
      %31 = arith.addf %10, %12 : vector<32x128xf32>
      %32 = vector.shape_cast %31 : vector<32x128xf32> to vector<4x8x128xf32>
      %cst_19 = arith.constant dense<0.000000e+00> : vector<8x128xf32>
      %33 = vector.multi_reduction <add>, %32, %cst_19 [0] : vector<4x8x128xf32> to vector<8x128xf32>
      %34 = arith.addf %30, %33 : vector<8x128xf32>
      %c0_20 = arith.constant 0 : index
      %c0_21 = arith.constant 0 : index
      %35 = vector.load %arg6[%c0_20, %c0_21] : memref<8x128xf32, #tpu.memory_space<vmem>>, vector<8x128xf32>
      tpu.vector_store %arg6[%c0_20, %c0_21], %34 {strides = array<i32>} : memref<8x128xf32, #tpu.memory_space<vmem>>, vector<8x128xf32>,
    } else {
    }
    %c0_i32_10 = arith.constant 0 : i32
    %21 = arith.cmpi eq, %arg1, %c0_i32_10 : i32
    %22 = arith.extui %21 : i1 to i32
    %c0_i32_11 = arith.constant 0 : i32
    %23 = arith.cmpi ne, %22, %c0_i32_11 : i32
    scf.if %23 {
      %c0_12 = arith.constant 0 : index
      %c0_13 = arith.constant 0 : index
      %24 = vector.load %arg5[%c0_12, %c0_13] : memref<8x128xf32, #tpu.memory_space<vmem>>, vector<8x128xf32>
      %cst_14 = arith.constant dense<0.000000e+00> : vector<128xf32>
      %25 = vector.multi_reduction <add>, %24, %cst_14 [0] : vector<8x128xf32> to vector<128xf32>
      %26 = vector.shape_cast %25 : vector<128xf32> to vector<1x128xf32>
      %c0_15 = arith.constant 0 : index
      %c0_16 = arith.constant 0 : index
      %27 = vector.load %arg6[%c0_15, %c0_16] : memref<8x128xf32, #tpu.memory_space<vmem>>, vector<8x128xf32>
      %cst_17 = arith.constant dense<0.000000e+00> : vector<128xf32>
      %28 = vector.multi_reduction <add>, %27, %cst_17 [0] : vector<8x128xf32> to vector<128xf32>
      %29 = vector.shape_cast %28 : vector<128xf32> to vector<1x128xf32>
      %30 = tpu.concatenate %26, %29 in 0 : vector<1x128xf32>, vector<1x128xf32> -> vector<2x128xf32>
      %c0_18 = arith.constant 0 : index
      %c0_19 = arith.constant 0 : index
      %c0_20 = arith.constant 0 : index
      %31 = vector.load %arg4[%c0_18, %c0_19, %c0_20] : memref<1x2x128xf32, #tpu.memory_space<vmem>>, vector<1x2x128xf32>
      %32 = vector.shape_cast %31 : vector<1x2x128xf32> to vector<2x128xf32>
      %33 = vector.shape_cast %30 : vector<2x128xf32> to vector<1x2x128xf32>
      tpu.vector_store %arg4[%c0_18, %c0_19, %c0_20], %33 {strides = array<i32>} : memref<1x2x128xf32, #tpu.memory_space<vmem>>, vector<1x2x128xf32>,
    } else {
    }
    return
  }
  func.func @transform_0(%arg0: i32, %arg1: i32) -> (i32, i32) {
    %c1_i32 = arith.constant 1 : i32
    %0 = arith.muli %arg0, %c1_i32 : i32
    %1 = arith.addi %0, %arg1 : i32
    %c0_i32 = arith.constant 0 : i32
    %2 = arith.minsi %1, %c0_i32 : i32
    %c0_i32_0 = arith.constant 0 : i32
    %c0_i32_1 = arith.constant 0 : i32
    return %2, %c0_i32_0 : i32, i32
  }
  func.func @transform_1(%arg0: i32, %arg1: i32) -> (i32, i32) {
    %c1_i32 = arith.constant 1 : i32
    %0 = arith.muli %arg0, %c1_i32 : i32
    %1 = arith.addi %0, %arg1 : i32
    %c0_i32 = arith.constant 0 : i32
    %2 = arith.minsi %1, %c0_i32 : i32
    %c0_i32_0 = arith.constant 0 : i32
    %c0_i32_1 = arith.constant 0 : i32
    return %2, %c0_i32_0 : i32, i32
  }
  func.func @transform_2(%arg0: i32, %arg1: i32) -> (i32, i32, i32) {
    %c0_i32 = arith.constant 0 : i32
    %c0_i32_0 = arith.constant 0 : i32
    %c0_i32_1 = arith.constant 0 : i32
    return %arg0, %c0_i32, %c0_i32_0 : i32, i32, i32
  }
}

</mosaic_0001>

<bundles_post_ra>
// kernel: tpu_custom_call.1
= control target key start
LH: loop header
LB: loop body
LE: loop exit
PB: predicated region body
PF: predicated region fallthrough
CT: control target
= control target key end

     0   :  { %7 = vsyncpa [#allocation5], 0  ;;  %s367_s0 = inlined_call_operand.hbm [shape: f32[16,128], index: 0, kind: input, shape index: {}]   ;;  %s368_s1 = inlined_call_operand.hbm [shape: s8[16,128], index: 1, kind: input, shape index: {}]   ;;  %s369_s2 = inlined_call_operand.hbm [shape: f32[1,2,128], index: 2, kind: output, shape index: {}]  }
   0x1   :  { %8 = vsyncpa [#allocation8], 0 }
   0x2   :  { %9 = vsyncpa [#allocation6], 0 }
   0x3   :  { %20 = vsyncadd [#allocation5], 256  ;;  %s309_s9 = smov [#allocation4]   ;;  %s237_s13 = scalar_lea.hbm %s367_s0, 256 }
   0x4   :  { %s25_s10 = sshll.u32 %s309_s9, 4  ;;  %p238_p0 = scmp.ne.s32.totalorder %s367_s0, %s237_s13  ;;  %s26_s10 = int_to_ptr.vmem [resolvable:$true] %s25_s10 }
   0x5   :  { %p241_p1 = scmp.lt.u32.totalorder %s237_s13, %s367_s0 }
   0x7   :  { %p243_p2 = pnand %p241_p1, %p238_p0 }
   0x9   :  { %246 = shalt.err (!%p243_p2)
}
   0xa   :  { %s247_s18 = scalar_lea.vmem %s26_s10, 256  ;;  %s251_s19 = scalar_lea.vmem %s26_s10, 512 }
   0xb   :  { %p248_p3 = scmp.ne.s32.totalorder %s26_s10, %s247_s18  ;;  %p252_p4 = scmp.lt.s32.totalorder %s26_s10, %s26_s10 }
   0xc   :  { %p253_p5 = scmp.lt.s32.totalorder %s251_s19, %s247_s18 }
   0xe   :  { %p254_p6 = por %p253_p5, %p252_p4 }
  0x10   :  { %p255_p7 = pnand %p254_p6, %p248_p3 }
  0x12   :  { %258 = shalt.err (!%p255_p7)
}
  0x13   :  { %s310_s20 = smov 128   ;;  %s311_s21 = smov 8  }
  0x14   :  { %31 = dma.hbm_to_vmem [thread:$0]  %s367_s0, 256, %s26_s10, [#allocation5], %s310_s20, %s310_s20, %s311_s21  }
  0x15   :  { %42 = vsyncadd [#allocation8], 64  ;;  %s312_s24 = smov [#allocation7]   ;;  %s259_s28 = scalar_lea.hbm %s368_s1, 64 }
  0x16   :  { %s47_s25 = sshll.u32 %s312_s24, 4  ;;  %p260_p8 = scmp.ne.s32.totalorder %s368_s1, %s259_s28  ;;  %s48_s25 = int_to_ptr.vmem [resolvable:$true] %s47_s25 }
  0x17   :  { %p263_p9 = scmp.lt.u32.totalorder %s259_s28, %s368_s1 }
  0x19   :  { %p265_p10 = pnand %p263_p9, %p260_p8 }
  0x1b   :  { %268 = shalt.err (!%p265_p10)
}
  0x1c   :  { %s269_s5 = scalar_lea.vmem %s48_s25, 64  ;;  %s273_s0 = scalar_lea.vmem %s48_s25, 128 }
  0x1d   :  { %p270_p11 = scmp.ne.s32.totalorder %s48_s25, %s269_s5  ;;  %p274_p12 = scmp.lt.s32.totalorder %s48_s25, %s48_s25 }
  0x1e   :  { %p275_p13 = scmp.lt.s32.totalorder %s273_s0, %s269_s5 }
  0x20   :  { %p276_p0 = por %p275_p13, %p274_p12 }
  0x22   :  { %p277_p1 = pnand %p276_p0, %p270_p11 }
  0x24   :  { %280 = shalt.err (!%p277_p1)
}
  0x25   :  { %s313_s6 = smov 32   ;;  %s314_s7 = smov 2  }
  0x26   :  { %53 = dma.hbm_to_vmem [thread:$0]  %s368_s1, 64, %s48_s25, [#allocation8], %s313_s6, %s313_s6, %s314_s7  }
  0x27   :  { %303 = dma.done.wait [#allocation5], 512  }
  0x28   :  { %304 = vsyncadd [#allocation5], 4294966784 }
  0x29   :  { %305 = dma.done.wait [#allocation8], 128  }
  0x2a   :  { %306 = vsyncadd [#allocation8], 4294967168  ;;  %v78_v0 = vld [vmem:[#allocation4] sm:$0xff]  ;;  %v79_v1 = vld [vmem:[#allocation4 + $0x8] sm:$0xff]  ;;  %s315_s1 = smov [#allocation9]   ;;  %vm199_vm0 = vcmask 1040384  }
  0x2b   :  { %v82_v2 = vmul.f32 0.5, %v78_v0  ;;  %v83_v3 = vmul.f32 0.5, %v79_v1  ;;  %v223_v4 = vld [vmem:[#allocation7] sm:$0xf]   ;;  %s208_s10 = sshll.u32 %s315_s1, 4  ;;  %s209_s10 = int_to_ptr.vmem [resolvable:$true] %s208_s10 }
  0x2c   :  { %v224_v5 = vunpack.c.0.s8 %v223_v4  ;;  %v225_v6 = vunpack.c.1.s8 %v223_v4  ;;  %s281_s11 = scalar_lea.vmem %s209_s10, 32  ;;  %p286_p3 = scmp.lt.s32.totalorder %s209_s10, %s209_s10 }
  0x2d   :  { %233 = vtanh.f32 %v82_v2  ;;  %p282_p2 = scmp.ne.s32.totalorder %s209_s10, %s281_s11  ;;  %p287_p4 = scmp.lt.s32.totalorder %s281_s11, %s281_s11 }
  0x2e   :  { %235 = vtanh.f32 %v83_v3  ;;  %v106_v10 = vcvt.s32.f32 %v224_v5  ;;  %v107_v12 = vcvt.s32.f32 %v225_v6 }
  0x2f   :  { %p288_p5 = por %p287_p4, %p286_p3 }
  0x31   :  { %p289_p6 = pnand %p288_p5, %p282_p2 }
  0x37   :  { %v234_v7 = vpop.eup %233 }
  0x38   :  { %v236_v8 = vpop.eup %235  ;;  %v90_v9 = vmul.f32 0.5, %v234_v7 }
  0x39   :  { %v91_v11 = vmul.f32 0.5, %v236_v8 }
  0x3a   :  { %v94_v13 = vadd.f32 0.5, %v90_v9 }
  0x3b   :  { %v95_v14 = vadd.f32 0.5, %v91_v11 }
  0x3c   :  { %v139_v15 = vmul.f32 %v106_v10, %v94_v13  ;;  %v149_v16 = vadd.f32 %v106_v10, %v94_v13 }
  0x3d   :  { %v140_v17 = vmul.f32 %v107_v12, %v95_v14  ;;  %v150_v18 = vadd.f32 %v107_v12, %v95_v14 }
  0x3f   :  { %v143_v19 = vadd.f32 %v140_v17, %v139_v15  ;;  %v153_v20 = vadd.f32 %v150_v18, %v149_v16 }
  0x41   :  { %v186_v21 = vrot.slane %v143_v19, 4  ;;  %v193_v22 = vrot.slane %v153_v20, 4 }
  0x43   :  { %v187_v23 = vadd.f32 %v186_v21, %v143_v19  ;;  %v194_v24 = vadd.f32 %v193_v22, %v153_v20 }
  0x45   :  { %v188_v25 = vrot.slane %v187_v23, 2  ;;  %v195_v26 = vrot.slane %v194_v24, 2 }
  0x47   :  { %v189_v27 = vadd.f32 %v188_v25, %v187_v23  ;;  %v196_v28 = vadd.f32 %v195_v26, %v194_v24 }
  0x49   :  { %v190_v29 = vrot.slane %v189_v27, 1  ;;  %v197_v30 = vrot.slane %v196_v28, 1 }
  0x4b   :  { %v191_v31 = vadd.f32 %v190_v29, %v189_v27  ;;  %v198_v32 = vadd.f32 %v197_v30, %v196_v28 }
  0x4d   :  { %v200_v33 = vsel %vm199_vm0, %v191_v31, %v198_v32 }
  0x4e   :  { %201 = vst [vmem:[#allocation9] sm:$0x3] %v200_v33 }
  0x4f   :  { %292 = shalt.err (!%p289_p6)
}
  0x50   :  { %s293_s14 = scalar_lea.hbm %s369_s2, 32 }
  0x51   :  { %p294_p7 = scmp.ne.s32.totalorder %s369_s2, %s293_s14  ;;  %p297_p8 = scmp.lt.u32.totalorder %s293_s14, %s369_s2 }
  0x53   :  { %p299_p9 = pnand %p297_p8, %p294_p7 }
  0x55   :  { %302 = shalt.err (!%p299_p9)
}
  0x56   :  { %211 = dma.vmem_to_hbm [thread:$0]  %s209_s10, 32, %s369_s2, [#allocation6]  }
  0x57   :  { %307 = dma.done.wait [#allocation6], 32  }
  0x58   :  { %308 = vsyncadd [#allocation6], 4294967264 }
  0x59   :  { %215 = vsyncpa [#allocation5], 1 }
  0x5a   :  { %216 = vsyncpa [#allocation8], 1 }
  0x5b   :  { %217 = vsyncpa [#allocation6], 1 }

</bundles_post_ra>
